<compile_context>
chip_gen: v6e
topology: v6e:2x2x1
jax: 0.10.0
libtpu: 0.0.40
codegen_flags: <defaults>
</compile_context>

<pallas_src>
import functools

import jax
import jax.numpy as jnp
from jax.experimental import pallas as pl
from jax.experimental.pallas import tpu as pltpu

_COMPUTE_DTYPE = jnp.bfloat16
_LANE = 128
_SUBLANE_BF16 = 16  # bf16 packs 16 sublanes per vreg


def _round_up(x, m):
    return ((x + m - 1) // m) * m


def _mlp_kernel(x_ref, w1_ref, b1_ref, w2_ref, b2_ref, w3_ref, b3_ref,
                wq_ref, bq_ref, out_ref):
    # x streamed as f32; cast to bf16 in-kernel (cheap VPU op on a 16-wide block).
    x = x_ref[...].astype(_COMPUTE_DTYPE)

    # fc1..fc3: bf16 MXU matmul with f32 accumulation, bf16 bias+ReLU epilogue.
    h = jnp.dot(x, w1_ref[...], preferred_element_type=jnp.float32)
    h = jnp.maximum(h.astype(_COMPUTE_DTYPE) + b1_ref[...], 0.0)

    h = jnp.dot(h, w2_ref[...], preferred_element_type=jnp.float32)
    h = jnp.maximum(h.astype(_COMPUTE_DTYPE) + b2_ref[...], 0.0)

    h = jnp.dot(h, w3_ref[...], preferred_element_type=jnp.float32)
    h = jnp.maximum(h.astype(_COMPUTE_DTYPE) + b3_ref[...], 0.0)

    # q_out head (no activation); lane-dense bf16 store (half the writeback bytes).
    q = jnp.dot(h, wq_ref[...], preferred_element_type=jnp.float32)
    out_ref[...] = (q.astype(_COMPUTE_DTYPE) + bq_ref[...]).astype(out_ref.dtype)


def prepare_params(params):
    """One-time (outside the jitted forward) cast/pad of weights to kernel layout.

    params: w1[Din,H], b1[1,H], w2[H,H], b2[1,H], w3[H,H], b3[1,H],
            wq[H,A], bq[1,A]   (weights stored transposed vs PyTorch [out,in])
    Returns (prepped_params, num_actions): bf16 weights/biases with wq/bq
    zero-padded to a multiple of 128 lanes.
    """
    num_actions = int(params["wq"].shape[1])
    a_pad = _round_up(max(num_actions, _LANE), _LANE)
    wq, bq = params["wq"], params["bq"]
    if a_pad != num_actions:
        wq = jnp.pad(wq, ((0, 0), (0, a_pad - num_actions)))
        bq = jnp.pad(bq, ((0, 0), (0, a_pad - num_actions)))
    prepped = dict(
        w1=params["w1"].astype(_COMPUTE_DTYPE),
        b1=params["b1"].astype(_COMPUTE_DTYPE),
        w2=params["w2"].astype(_COMPUTE_DTYPE),
        b2=params["b2"].astype(_COMPUTE_DTYPE),
        w3=params["w3"].astype(_COMPUTE_DTYPE),
        b3=params["b3"].astype(_COMPUTE_DTYPE),
        wq=wq.astype(_COMPUTE_DTYPE),
        bq=bq.astype(_COMPUTE_DTYPE),
    )
    return prepped, num_actions


@functools.partial(jax.jit, static_argnames=("num_actions", "tile_b"))
def residual_advantage_forward(x, prepped, *, num_actions, tile_b=2048):
    """ResidualAdvantage forward pass as one batch-tiled Pallas kernel.

    x: [B, obs+goal] float32
    prepped: output of prepare_params()
    returns q_values: [B, num_actions] float32
    """
    B, D_in = x.shape
    H = prepped["w1"].shape[1]
    A_pad = prepped["wq"].shape[1]

    # --- batch tiling ---------------------------------------------------------
    # multiple of 16 (bf16 sublane packing), no bigger than the padded batch,
    # and capped so the grid has >=2 steps when the batch allows (v7x megacore).
    B16 = _round_up(B, _SUBLANE_BF16)
    tile_b = max(_SUBLANE_BF16, (tile_b // _SUBLANE_BF16) * _SUBLANE_BF16)
    tile_b = min(tile_b, B16)
    if B16 >= 2 * _SUBLANE_BF16:
        tile_b = min(tile_b, _round_up(pl.cdiv(B16, 2), _SUBLANE_BF16))
    B_pad = _round_up(B, tile_b)

    x_p = x if B_pad == B else jnp.pad(x, ((0, B_pad - B), (0, 0)))

    args = (x_p, prepped["w1"], prepped["b1"], prepped["w2"], prepped["b2"],
            prepped["w3"], prepped["b3"], prepped["wq"], prepped["bq"])

    # --- specs ----------------------------------------------------------------
    grid = (B_pad // tile_b,)
    const_map = lambda i: (0, 0)          # weights/biases: DMA'd once, VMEM-resident
    in_specs = [pl.BlockSpec((tile_b, D_in), lambda i: (i, 0))]   # x streams per tile
    in_specs += [pl.BlockSpec(a.shape, const_map) for a in args[1:]]
    out_spec = pl.BlockSpec((tile_b, A_pad), lambda i: (i, 0))

    flops = 2 * B_pad * (D_in * H + H * H + H * H + H * A_pad)
    bytes_accessed = (sum(int(a.size) * a.dtype.itemsize for a in args)
                      + B_pad * A_pad * 2)

    out = pl.pallas_call(
        _mlp_kernel,
        out_shape=jax.ShapeDtypeStruct((B_pad, A_pad), _COMPUTE_DTYPE),
        grid=grid,
        in_specs=in_specs,
        out_specs=out_spec,
        compiler_params=pltpu.CompilerParams(
            dimension_semantics=("parallel",),      # megacore split on v7x
            vmem_limit_bytes=32 * 1024 * 1024,      # safe on v5e/v6e/v7x
        ),
        cost_estimate=pl.CostEstimate(
            flops=flops, transcendentals=0, bytes_accessed=bytes_accessed),
    )(*args)

    return out[:B, :num_actions].astype(jnp.float32)


def init_params(key, obs, goal, num_actions, hidden=256):
    """Deterministic synthetic init. fc1..fc3 use PyTorch-like uniform bounds;
    q_out is explicitly zero-initialized as in the module's __init__."""
    d_in = obs + goal
    k1, k2, k3, k4, k5, k6 = jax.random.split(key, 6)

    def lin_init(kw, kb, fan_in, fan_out):
        bound = 1.0 / jnp.sqrt(jnp.float32(fan_in))
        # stored as [fan_in, fan_out] (transposed vs PyTorch's [out, in])
        w = jax.random.uniform(kw, (fan_in, fan_out), jnp.float32, -bound, bound)
        b = jax.random.uniform(kb, (1, fan_out), jnp.float32, -bound, bound)
        return w, b

    w1, b1 = lin_init(k1, k2, d_in, hidden)
    w2, b2 = lin_init(k3, k4, hidden, hidden)
    w3, b3 = lin_init(k5, k6, hidden, hidden)
    wq = jnp.zeros((hidden, num_actions), jnp.float32)   # q_out.weight = 0
    bq = jnp.zeros((1, num_actions), jnp.float32)        # q_out.bias   = 0
    return dict(w1=w1, b1=b1, w2=w2, b2=b2, w3=w3, b3=b3, wq=wq, bq=bq)


def _reference_forward(x, p):
    """Pure-JAX reference with the same bf16-matmul / f32-accumulate /
    bf16-epilogue numerics as the kernel."""
    bf = _COMPUTE_DTYPE

    def layer(a, w, b, relu):
        acc = jnp.dot(a.astype(bf), w.astype(bf),
                      preferred_element_type=jnp.float32)
        h = acc.astype(bf) + b.astype(bf)
        return jnp.maximum(h, 0.0) if relu else h

    h = layer(x, p["w1"], p["b1"], True)
    h = layer(h, p["w2"], p["b2"], True)
    h = layer(h, p["w3"], p["b3"], True)
    q = layer(h, p["wq"], p["bq"], False)
    return q.astype(jnp.float32)


if __name__ == "__main__":
    # env_params: obs=12, goal=4, num_actions=8 -> input dim 16
    obs, goal, num_actions = 12, 4, 8
    batch = 40            # not a multiple of 16/tile -> exercises batch padding

    key = jax.random.PRNGKey(0)
    kx, kp, kw, kb = jax.random.split(key, 4)
    x = jax.random.normal(kx, (batch, obs + goal), jnp.float32)

    # 1) Faithful module init (q_out zero-initialized -> q_values are all zero).
    params = init_params(kp, obs, goal, num_actions)
    prepped, n_act = prepare_params(params)
    q = jax.block_until_ready(
        residual_advantage_forward(x, prepped, num_actions=n_act))
    assert q.shape == (batch, num_actions)
    assert jnp.allclose(q, 0.0)
    assert jnp.allclose(q, _reference_forward(x, params), atol=2e-2, rtol=2e-2)

    # 2) Non-zero q_out head to validate the full matmul chain numerically,
    #    with both the default tile and a small tile (multi-step grid).
    params_nz = dict(params)
    params_nz["wq"] = jax.random.uniform(
        kw, (256, num_actions), jnp.float32, -0.1, 0.1)
    params_nz["bq"] = jax.random.uniform(
        kb, (1, num_actions), jnp.float32, -0.1, 0.1)
    prepped_nz, _ = prepare_params(params_nz)

    q_def = jax.block_until_ready(
        residual_advantage_forward(x, prepped_nz, num_actions=num_actions))
    q_small = jax.block_until_ready(
        residual_advantage_forward(x, prepped_nz, num_actions=num_actions,
                                   tile_b=16))
    q_ref = _reference_forward(x, params_nz)

    assert q_def.shape == (batch, num_actions)
    assert jnp.allclose(q_def, q_ref, atol=2e-2, rtol=2e-2)
    assert jnp.allclose(q_small, q_ref, atol=2e-2, rtol=2e-2)
    assert jnp.allclose(q_def, q_small, atol=1e-5)   # tiling-invariant

    print("KERNEL_OK")
</pallas_src>

<mosaic_0001>
module attributes {stable_mosaic.version = 11 : i64} {
  func.func @_mlp_kernel(%arg0: i32, %arg1: memref<32x16xf32, #tpu.memory_space<vmem>>, %arg2: memref<16x256xbf16, #tpu.memory_space<vmem>>, %arg3: memref<1x256xbf16, #tpu.memory_space<vmem>>, %arg4: memref<256x256xbf16, #tpu.memory_space<vmem>>, %arg5: memref<1x256xbf16, #tpu.memory_space<vmem>>, %arg6: memref<256x256xbf16, #tpu.memory_space<vmem>>, %arg7: memref<1x256xbf16, #tpu.memory_space<vmem>>, %arg8: memref<256x128xbf16, #tpu.memory_space<vmem>>, %arg9: memref<1x128xbf16, #tpu.memory_space<vmem>>, %arg10: memref<32x128xbf16, #tpu.memory_space<vmem>>) attributes {dimension_semantics = [#tpu.dimension_semantics<parallel>], iteration_bounds = array<i64: 2>, scalar_prefetch = 0 : i64, scratch_operands = 0 : i64, tpu.core_type = #tpu.core_type<tc>, window_params = [{transform_indices = @transform_0, window_bounds = array<i64: 32, 16>}, {pipeline_mode = #tpu.pipeline_mode<synchronous>, transform_indices = @transform_1, window_bounds = array<i64: 16, 256>}, {pipeline_mode = #tpu.pipeline_mode<synchronous>, transform_indices = @transform_2, window_bounds = array<i64: 1, 256>}, {pipeline_mode = #tpu.pipeline_mode<synchronous>, transform_indices = @transform_3, window_bounds = array<i64: 256, 256>}, {pipeline_mode = #tpu.pipeline_mode<synchronous>, transform_indices = @transform_4, window_bounds = array<i64: 1, 256>}, {pipeline_mode = #tpu.pipeline_mode<synchronous>, transform_indices = @transform_5, window_bounds = array<i64: 256, 256>}, {pipeline_mode = #tpu.pipeline_mode<synchronous>, transform_indices = @transform_6, window_bounds = array<i64: 1, 256>}, {pipeline_mode = #tpu.pipeline_mode<synchronous>, transform_indices = @transform_7, window_bounds = array<i64: 256, 128>}, {pipeline_mode = #tpu.pipeline_mode<synchronous>, transform_indices = @transform_8, window_bounds = array<i64: 1, 128>}, {transform_indices = @transform_9, window_bounds = array<i64: 32, 128>}]} {
    %c0 = arith.constant 0 : index
    %c0_0 = arith.constant 0 : index
    %0 = vector.load %arg1[%c0, %c0_0] : memref<32x16xf32, #tpu.memory_space<vmem>>, vector<32x16xf32>
    %1 = arith.truncf %0 : vector<32x16xf32> to vector<32x16xbf16>
    %c0_1 = arith.constant 0 : index
    %c0_2 = arith.constant 0 : index
    %2 = vector.load %arg2[%c0_1, %c0_2] : memref<16x256xbf16, #tpu.memory_space<vmem>>, vector<16x256xbf16>
    %cst = arith.constant dense<0.000000e+00> : vector<32x256xf32>
    %3 = tpu.matmul %1, %2, %cst {dimension_numbers = #tpu.dot_dimension_numbers<[1], [0], [0], [1], [0, 0, 1, 1], [], []>} : vector<32x16xbf16>, vector<16x256xbf16>, vector<32x256xf32> -> vector<32x256xf32>
    %4 = arith.truncf %3 : vector<32x256xf32> to vector<32x256xbf16>
    %c0_3 = arith.constant 0 : index
    %c0_4 = arith.constant 0 : index
    %5 = vector.load %arg3[%c0_3, %c0_4] : memref<1x256xbf16, #tpu.memory_space<vmem>>, vector<1x256xbf16>
    %6 = vector.broadcast %5 : vector<1x256xbf16> to vector<32x256xbf16>
    %7 = arith.addf %4, %6 : vector<32x256xbf16>
    %cst_5 = arith.constant 0.000000e+00 : bf16
    %8 = vector.broadcast %cst_5 : bf16 to vector<32x256xbf16>
    %9 = arith.maximumf %7, %8 : vector<32x256xbf16>
    %c0_6 = arith.constant 0 : index
    %c0_7 = arith.constant 0 : index
    %10 = vector.load %arg4[%c0_6, %c0_7] : memref<256x256xbf16, #tpu.memory_space<vmem>>, vector<256x256xbf16>
    %cst_8 = arith.constant dense<0.000000e+00> : vector<32x256xf32>
    %11 = tpu.matmul %9, %10, %cst_8 {dimension_numbers = #tpu.dot_dimension_numbers<[1], [0], [0], [1], [0, 0, 1, 1], [], []>} : vector<32x256xbf16>, vector<256x256xbf16>, vector<32x256xf32> -> vector<32x256xf32>
    %12 = arith.truncf %11 : vector<32x256xf32> to vector<32x256xbf16>
    %c0_9 = arith.constant 0 : index
    %c0_10 = arith.constant 0 : index
    %13 = vector.load %arg5[%c0_9, %c0_10] : memref<1x256xbf16, #tpu.memory_space<vmem>>, vector<1x256xbf16>
    %14 = vector.broadcast %13 : vector<1x256xbf16> to vector<32x256xbf16>
    %15 = arith.addf %12, %14 : vector<32x256xbf16>
    %cst_11 = arith.constant 0.000000e+00 : bf16
    %16 = vector.broadcast %cst_11 : bf16 to vector<32x256xbf16>
    %17 = arith.maximumf %15, %16 : vector<32x256xbf16>
    %c0_12 = arith.constant 0 : index
    %c0_13 = arith.constant 0 : index
    %18 = vector.load %arg6[%c0_12, %c0_13] : memref<256x256xbf16, #tpu.memory_space<vmem>>, vector<256x256xbf16>
    %cst_14 = arith.constant dense<0.000000e+00> : vector<32x256xf32>
    %19 = tpu.matmul %17, %18, %cst_14 {dimension_numbers = #tpu.dot_dimension_numbers<[1], [0], [0], [1], [0, 0, 1, 1], [], []>} : vector<32x256xbf16>, vector<256x256xbf16>, vector<32x256xf32> -> vector<32x256xf32>
    %20 = arith.truncf %19 : vector<32x256xf32> to vector<32x256xbf16>
    %c0_15 = arith.constant 0 : index
    %c0_16 = arith.constant 0 : index
    %21 = vector.load %arg7[%c0_15, %c0_16] : memref<1x256xbf16, #tpu.memory_space<vmem>>, vector<1x256xbf16>
    %22 = vector.broadcast %21 : vector<1x256xbf16> to vector<32x256xbf16>
    %23 = arith.addf %20, %22 : vector<32x256xbf16>
    %cst_17 = arith.constant 0.000000e+00 : bf16
    %24 = vector.broadcast %cst_17 : bf16 to vector<32x256xbf16>
    %25 = arith.maximumf %23, %24 : vector<32x256xbf16>
    %c0_18 = arith.constant 0 : index
    %c0_19 = arith.constant 0 : index
    %26 = vector.load %arg8[%c0_18, %c0_19] : memref<256x128xbf16, #tpu.memory_space<vmem>>, vector<256x128xbf16>
    %cst_20 = arith.constant dense<0.000000e+00> : vector<32x128xf32>
    %27 = tpu.matmul %25, %26, %cst_20 {dimension_numbers = #tpu.dot_dimension_numbers<[1], [0], [0], [1], [0, 0, 1, 1], [], []>} : vector<32x256xbf16>, vector<256x128xbf16>, vector<32x128xf32> -> vector<32x128xf32>
    %28 = arith.truncf %27 : vector<32x128xf32> to vector<32x128xbf16>
    %c0_21 = arith.constant 0 : index
    %c0_22 = arith.constant 0 : index
    %29 = vector.load %arg9[%c0_21, %c0_22] : memref<1x128xbf16, #tpu.memory_space<vmem>>, vector<1x128xbf16>
    %30 = vector.broadcast %29 : vector<1x128xbf16> to vector<32x128xbf16>
    %31 = arith.addf %28, %30 : vector<32x128xbf16>
    %c0_23 = arith.constant 0 : index
    %c0_24 = arith.constant 0 : index
    %32 = vector.load %arg10[%c0_23, %c0_24] : memref<32x128xbf16, #tpu.memory_space<vmem>>, vector<32x128xbf16>
    tpu.vector_store %arg10[%c0_23, %c0_24], %31 {strides = array<i32>} : memref<32x128xbf16, #tpu.memory_space<vmem>>, vector<32x128xbf16>,
    return
  }
  func.func @transform_0(%arg0: i32) -> (i32, i32) {
    %c0_i32 = arith.constant 0 : i32
    %c0_i32_0 = arith.constant 0 : i32
    return %arg0, %c0_i32 : i32, i32
  }
  func.func @transform_1(%arg0: i32) -> (i32, i32) {
    %c0_i32 = arith.constant 0 : i32
    %c0_i32_0 = arith.constant 0 : i32
    %c0_i32_1 = arith.constant 0 : i32
    return %c0_i32, %c0_i32_0 : i32, i32
  }
  func.func @transform_2(%arg0: i32) -> (i32, i32) {
    %c0_i32 = arith.constant 0 : i32
    %c0_i32_0 = arith.constant 0 : i32
    %c0_i32_1 = arith.constant 0 : i32
    return %c0_i32, %c0_i32_0 : i32, i32
  }
  func.func @transform_3(%arg0: i32) -> (i32, i32) {
    %c0_i32 = arith.constant 0 : i32
    %c0_i32_0 = arith.constant 0 : i32
    %c0_i32_1 = arith.constant 0 : i32
    return %c0_i32, %c0_i32_0 : i32, i32
  }
  func.func @transform_4(%arg0: i32) -> (i32, i32) {
    %c0_i32 = arith.constant 0 : i32
    %c0_i32_0 = arith.constant 0 : i32
    %c0_i32_1 = arith.constant 0 : i32
    return %c0_i32, %c0_i32_0 : i32, i32
  }
  func.func @transform_5(%arg0: i32) -> (i32, i32) {
    %c0_i32 = arith.constant 0 : i32
    %c0_i32_0 = arith.constant 0 : i32
    %c0_i32_1 = arith.constant 0 : i32
    return %c0_i32, %c0_i32_0 : i32, i32
  }
  func.func @transform_6(%arg0: i32) -> (i32, i32) {
    %c0_i32 = arith.constant 0 : i32
    %c0_i32_0 = arith.constant 0 : i32
    %c0_i32_1 = arith.constant 0 : i32
    return %c0_i32, %c0_i32_0 : i32, i32
  }
  func.func @transform_7(%arg0: i32) -> (i32, i32) {
    %c0_i32 = arith.constant 0 : i32
    %c0_i32_0 = arith.constant 0 : i32
    %c0_i32_1 = arith.constant 0 : i32
    return %c0_i32, %c0_i32_0 : i32, i32
  }
  func.func @transform_8(%arg0: i32) -> (i32, i32) {
    %c0_i32 = arith.constant 0 : i32
    %c0_i32_0 = arith.constant 0 : i32
    %c0_i32_1 = arith.constant 0 : i32
    return %c0_i32, %c0_i32_0 : i32, i32
  }
  func.func @transform_9(%arg0: i32) -> (i32, i32) {
    %c0_i32 = arith.constant 0 : i32
    %c0_i32_0 = arith.constant 0 : i32
    return %arg0, %c0_i32 : i32, i32
  }
}

</mosaic_0001>

<bundles_post_ra>
// kernel: residual_advantage_forward.1
= control target key start
LH: loop header
LB: loop body
LE: loop exit
PB: predicated region body
PF: predicated region fallthrough
CT: control target
= control target key end

     0   :  { %14 = vsyncpa [#allocation3], 0  ;;  %s1960_s0 = inlined_call_operand.vmem [shape: f32[64,16], index: 0, kind: input, shape index: {}]   ;;  %s1961_s1 = inlined_call_operand.vmem [shape: bf16[16,256], index: 1, kind: input, shape index: {}]   ;;  %s1962_s2 = inlined_call_operand.vmem [shape: bf16[1,256], index: 2, kind: input, shape index: {}]   ;;  %s1963_s3 = inlined_call_operand.hbm [shape: bf16[256,256], index: 3, kind: input, shape index: {}]   ;;  %s1964_s4 = inlined_call_operand.vmem [shape: bf16[1,256], index: 4, kind: input, shape index: {}]   ;;  %s1965_s5 = inlined_call_operand.hbm [shape: bf16[256,256], index: 5, kind: input, shape index: {}]   ;;  %s1966_s6 = inlined_call_operand.vmem [shape: bf16[1,256], index: 6, kind: input, shape index: {}]   ;;  %s1967_s7 = inlined_call_operand.vmem [shape: bf16[256,128], index: 7, kind: input, shape index: {}]   ;;  %s1968_s8 = inlined_call_operand.vmem [shape: bf16[1,128], index: 8, kind: input, shape index: {}]   ;;  %s1969_s9 = inlined_call_operand.vmem [shape: bf16[64,128], index: 9, kind: output, shape index: {}]  }
   0x1   :  { %15 = vsyncpa [#allocation5], 0  ;;  %s1792_s30 = smov 0  }
   0x2 LB: > { %s1370_s10 = sadd.s32 4294967295, %s1734_s30   ;;  %p1372_p0 = scmp.ge.s32.totalorder %s1734_s30, 1  ;;  %s1734_s30 = sphi %s1792_s30, %s21_s30  }
   0x3   : > { %p246_p1 = scmp.lt.s32.totalorder %s1734_s30, 3  ;;  %s1736_s11 = smov [#allocation2]  }
   0x4   : > { %s264_s12 = sshll.u32 %s1736_s11, 4  ;;  %p1806_p3 = scmp.eq.s32.totalorder %s1370_s10, 0  ;;  %s265_s12 = int_to_ptr.vmem [resolvable:$true] %s264_s12 }
   0x5   : > { %p1800_p2 = pnand %p1372_p0, %p246_p1  ;;  %s1737_s15 = smov [#allocation4]  }
   0x6   : > { %s280_s16 = sshll.u32 %s1737_s15, 4  ;;  %s1679_s18 = scalar_lea.vmem %s265_s12, 4096  ;;  %s281_s16 = int_to_ptr.vmem [resolvable:$true] %s280_s16 }
   0x7   : > { %p1528_p4 = pneg %p1800_p2  ;;  %p1680_p7 = scmp.ne.s32.totalorder %s265_s12, %s1679_s18 }
   0x8   : > { %p1687_p10 = scmp.lt.s32.totalorder %s265_s12, %s265_s12  ;;  %p1688_p11 = scmp.lt.s32.totalorder %s1679_s18, %s1679_s18 }
   0x9   : > { %p1814_p5 = pnand %p1806_p3, %p1528_p4 }
   0xa   : > { %p1689_p12 = por %p1688_p11, %p1687_p10 }
   0xb   : > { %p1670_p6 = pneg %p1814_p5 }
   0xd   : > { %p1682_p8 = pnand %p1680_p7, %p1670_p6 }
   0xf   : > { %p1683_p9 = pneg %p1682_p8 }
  0x11   : > { %p1690_p13 = pnand %p1689_p12, %p1683_p9 }
  0x13   : > { %1693 = shalt.err (!%p1690_p13)
}
  0x14   : > { %s1738_s19 = smov 128   ;;  %s1739_s20 = smov 8  }
  0x15   : > { %1531 = dma.hbm_to_vmem [thread:$0]  (!%p1814_p5), %s1963_s3, 4096, %s265_s12, [#allocation3], %s1738_s19, %s1738_s19, %s1739_s20  }
  0x16   : > { %s1705_s23 = scalar_lea.vmem %s281_s16, 4096  ;;  %p1713_p7 = scmp.lt.s32.totalorder %s281_s16, %s281_s16 }
  0x17   : > { %p1706_p0 = scmp.ne.s32.totalorder %s281_s16, %s1705_s23  ;;  %p1714_p8 = scmp.lt.s32.totalorder %s1705_s23, %s1705_s23 }
  0x19   : > { %p1708_p1 = pnand %p1706_p0, %p1670_p6  ;;  %p1715_p10 = por %p1714_p8, %p1713_p7 }
  0x1b   : > { %p1709_p4 = pneg %p1708_p1 }
  0x1d   : > { %p1716_p9 = pnand %p1715_p10, %p1709_p4 }
  0x1f   : > { %1719 = shalt.err (!%p1716_p9)
}
  0x20   : > { %1534 = dma.hbm_to_vmem [thread:$0]  (!%p1814_p5), %s1965_s5, 4096, %s281_s16, [#allocation5], %s1738_s19, %s1738_s19, %s1739_s20  }
  0x21   : > { %314 = sbr.rel (%p1800_p2) target bundleno = 884 (0x374), region = 56 }
  0x26   : > { %1725 = dma.done.wait (%p1806_p3), [#allocation3], 4096  }
  0x27   : > { %1727 = vsyncadd (%p1806_p3), [#allocation3], 4294963200 }
  0x28   : > { %1729 = dma.done.wait (%p1806_p3), [#allocation5], 4096  }
  0x29   : > { %1731 = vsyncadd (%p1806_p3), [#allocation5], 4294963200  ;;  %s1379_s26 = sshll.u32 %s1370_s10, 2  ;;  %v1740_v0 = vmov 0   ;;  %v1553_v1 = vld [vmem:[%s1961_s1 + $0x4] ss:$8 sps:$4 sm:$0xff]  }
  0x2a   : > { %424 = vmatprep.mubr.bf16.mxu0 %v1740_v0  ;;  %p355_p5 = scmp.lt.s32.totalorder %s1379_s26, 7  ;;  %v1555_v2 = vld [vmem:[%s1961_s1] ss:$8 sps:$4 sm:$0xff]   ;;  %406 = vmatprep.subr.bf16.mxu0 %v1553_v1  ;;  %vm385_vm0 = vcmask 130048   ;;  %v1556_v6 = vld [vmem:[#allocation2 + $0x74] ss:$8 sps:$4 sm:$0xff]  }
  0x2b   : > { %407 = vmatpush1.bf16.msra.mxu0 %v1555_v2  ;;  %v1558_v7 = vld [vmem:[#allocation2 + $0x70] ss:$8 sps:$4 sm:$0xff]   ;;  %v1559_v8 = vld [vmem:[#allocation2 + $0x64] ss:$8 sps:$4 sm:$0xff]   ;;  %687 = vmatprep.subr.bf16.mxu1 %v1556_v6  ;;  %v1561_v10 = vld [vmem:[#allocation2 + $0x60] ss:$8 sps:$4 sm:$0xff]   ;;  %v462_v6 = vlaneseq }
  0x2c   : > { %s1974_s26 = smov (!%p355_p5, %s1379_s26), 7  ;;  %688 = vmatpush1.bf16.msra.mxu1 %v1558_v7  ;;  %v1562_v12 = vld [vmem:[#allocation2 + $0x54] ss:$8 sps:$4 sm:$0xff]   ;;  %v1564_v14 = vld [vmem:[#allocation2 + $0x50] ss:$8 sps:$4 sm:$0xff]  }
  0x2d   : > { %s1380_s27 = sshll.u32 %s1974_s26, 3  ;;  %689 = vmatprep.subr.bf16.mxu1 %v1559_v8  ;;  %v1565_v15 = vld [vmem:[#allocation2 + $0x44] ss:$8 sps:$4 sm:$0xff]   ;;  %v1567_v16 = vld [vmem:[#allocation2 + $0x40] ss:$8 sps:$4 sm:$0xff]   ;;  %v463_v8 = vshrl.u32 %v462_v6, 7 }
  0x2e   : > { %s358_s11 = scalar_lea.vmem %s1960_s0, %s1380_s27  ;;  %v1568_v17 = vld [vmem:[#allocation2 + $0x34] ss:$8 sps:$4 sm:$0xff]   ;;  %v1570_v18 = vld [vmem:[#allocation2 + $0x30] ss:$8 sps:$4 sm:$0xff]   ;;  %v1571_v19 = vld [vmem:[#allocation2 + $0x24] ss:$8 sps:$4 sm:$0xff]  }
  0x2f   : > { %v367_v3 = vld [vmem:[%s358_s11] sm:$0xff]  ;;  %v368_v4 = vld [vmem:[%s358_s11 + $0x8] sm:$0xff]  ;;  %v369_v9 = vld [vmem:[%s358_s11 + $0x10] sm:$0xff]  ;;  %s1382_s17 = sshll.u32 %s1974_s26, 2 }
  0x30   : > { %v371_v5 = vpack.c.bf16 %v368_v4, %v367_v3  ;;  %v370_v11 = vld [vmem:[%s358_s11 + $0x18] sm:$0xff]  ;;  %690 = vmatpush1.bf16.msra.mxu1 %v1561_v10  ;;  %v1573_v20 = vld [vmem:[#allocation2 + $0x20] ss:$8 sps:$4 sm:$0xff]   ;;  %v1577_v23 = vld [vmem:[#allocation2 + $0x4] ss:$8 sps:$4 sm:$0xff]   ;;  %s364_s20 = scalar_lea.vmem %s1969_s9, %s1382_s17 }
  0x31   : > { %v372_v13 = vpack.c.bf16 %v370_v11, %v369_v9  ;;  %691 = vmatprep.subr.bf16.mxu1 %v1562_v12  ;;  %v1574_v21 = vld [vmem:[#allocation2 + $0x14] ss:$8 sps:$4 sm:$0xff]   ;;  %v1576_v22 = vld [vmem:[#allocation2 + $0x10] ss:$8 sps:$4 sm:$0xff]   ;;  %v1579_v24 = vld [vmem:[#allocation2] ss:$8 sps:$4 sm:$0xff]  }
  0x32   : > { %1385 = vmatmul.mubr.msk.bf16.vlgmr.msra.gmra.mxu0 %vm385_vm0, %v371_v5  ;;  %v1580_v25 = vld [vmem:[#allocation2 + $0xf4] ss:$8 sps:$4 sm:$0xff]   ;;  %v1582_v26 = vld [vmem:[#allocation2 + $0xf0] ss:$8 sps:$4 sm:$0xff]   ;;  %v1583_v27 = vld [vmem:[#allocation2 + $0xe4] ss:$8 sps:$4 sm:$0xff]  }
  0x33   : > { %434 = vmatprep.mubr.bf16.mxu0 %v1740_v0  ;;  %v1585_v28 = vld [vmem:[#allocation2 + $0xe0] ss:$8 sps:$4 sm:$0xff]   ;;  %v1586_v29 = vld [vmem:[#allocation2 + $0xd4] ss:$8 sps:$4 sm:$0xff]   ;;  %v1588_v30 = vld [vmem:[#allocation2 + $0xd0] ss:$8 sps:$4 sm:$0xff]  }
  0x34   : > { %692 = vmatpush1.bf16.msra.mxu1 %v1564_v14  ;;  %v1589_v31 = vld [vmem:[#allocation2 + $0xc4] ss:$8 sps:$4 sm:$0xff]   ;;  %v1591_v32 = vld [vmem:[#allocation2 + $0xc0] ss:$8 sps:$4 sm:$0xff]   ;;  %v1592_v33 = vld [vmem:[#allocation2 + $0xb4] ss:$8 sps:$4 sm:$0xff]  }
  0x35   : > { %693 = vmatprep.subr.bf16.mxu1 %v1565_v15  ;;  %v1594_v34 = vld [vmem:[#allocation2 + $0xb0] ss:$8 sps:$4 sm:$0xff]   ;;  %v1595_v35 = vld [vmem:[#allocation2 + $0xa4] ss:$8 sps:$4 sm:$0xff]   ;;  %v1597_v36 = vld [vmem:[#allocation2 + $0xa0] ss:$8 sps:$4 sm:$0xff]  }
  0x36   : > { %v1598_v37 = vld [vmem:[#allocation2 + $0x94] ss:$8 sps:$4 sm:$0xff]   ;;  %v1600_v38 = vld [vmem:[#allocation2 + $0x90] ss:$8 sps:$4 sm:$0xff]   ;;  %v1601_v39 = vld [vmem:[#allocation2 + $0x84] ss:$8 sps:$4 sm:$0xff]  }
  0x37   : > { %v1603_v40 = vld [vmem:[#allocation2 + $0x80] ss:$8 sps:$4 sm:$0xff]   ;;  %v1604_v41 = vld [vmem:[#allocation4 + $0x70] ss:$8 sps:$4 sm:$0xff]   ;;  %v1606_v42 = vld [vmem:[#allocation4 + $0x74] ss:$8 sps:$4 sm:$0xff]  }
  0x38   : > { %694 = vmatpush1.bf16.msra.mxu1 %v1567_v16  ;;  %v1609_v43 = vld [vmem:[#allocation4 + $0x64] ss:$8 sps:$4 sm:$0xff]   ;;  %982 = vmatprep.subr.bf16.mxu0 %v1606_v42  ;;  %v1607_v44 = vld [vmem:[#allocation4 + $0x60] ss:$8 sps:$4 sm:$0xff]   ;;  %v1612_v45 = vld [vmem:[#allocation4 + $0x54] ss:$8 sps:$4 sm:$0xff]  }
  0x39   : > { %695 = vmatprep.subr.bf16.mxu1 %v1568_v17  ;;  %983 = vmatpush1.bf16.msra.mxu0 %v1604_v41  ;;  %v1610_v46 = vld [vmem:[#allocation4 + $0x50] ss:$8 sps:$4 sm:$0xff]   ;;  %v1615_v47 = vld [vmem:[#allocation4 + $0x44] ss:$8 sps:$4 sm:$0xff]   ;;  %v1613_v48 = vld [vmem:[#allocation4 + $0x40] ss:$8 sps:$4 sm:$0xff]  }
  0x3a   : > { %1386 = vmatmul.mubr.msk.bf16.gmra.mxu0 %vm385_vm0, %v372_v13  ;;  %984 = vmatprep.subr.bf16.mxu0 %v1609_v43  ;;  %v1618_v49 = vld [vmem:[#allocation4 + $0x34] ss:$8 sps:$4 sm:$0xff]   ;;  %v1616_v50 = vld [vmem:[#allocation4 + $0x30] ss:$8 sps:$4 sm:$0xff]   ;;  %v1621_v51 = vld [vmem:[#allocation4 + $0x24] ss:$8 sps:$4 sm:$0xff]  }
  0x3b   : > { %v1619_v52 = vld [vmem:[#allocation4 + $0x20] ss:$8 sps:$4 sm:$0xff]   ;;  %v1624_v53 = vld [vmem:[#allocation4 + $0x14] ss:$8 sps:$4 sm:$0xff]   ;;  %v1622_v54 = vld [vmem:[#allocation4 + $0x10] ss:$8 sps:$4 sm:$0xff]  }
  0x3c   : > { %696 = vmatpush1.bf16.msra.mxu1 %v1570_v18  ;;  %v1627_v55 = vld [vmem:[#allocation4 + $0x4] ss:$8 sps:$4 sm:$0xff]   ;;  %v1625_v56 = vld [vmem:[#allocation4] ss:$8 sps:$4 sm:$0xff]   ;;  %v1630_v57 = vld [vmem:[#allocation4 + $0xf4] ss:$8 sps:$4 sm:$0xff]  }
  0x3d   : > { %697 = vmatprep.subr.bf16.mxu1 %v1571_v19  ;;  %985 = vmatpush1.bf16.msra.mxu0 %v1607_v44  ;;  %v1628_v58 = vld [vmem:[#allocation4 + $0xf0] ss:$8 sps:$4 sm:$0xff]   ;;  %v1633_v59 = vld [vmem:[#allocation4 + $0xe4] ss:$8 sps:$4 sm:$0xff]   ;;  %v1631_v60 = vld [vmem:[#allocation4 + $0xe0] ss:$8 sps:$4 sm:$0xff]  }
  0x3e   : > { %986 = vmatprep.subr.bf16.mxu0 %v1612_v45  ;;  %v1636_v61 = vld [vmem:[#allocation4 + $0xd4] ss:$8 sps:$4 sm:$0xff]   ;;  %v1634_v62 = vld [vmem:[#allocation4 + $0xd0] ss:$8 sps:$4 sm:$0xff]   ;;  %v1639_v63 = vld [vmem:[#allocation4 + $0xc4] ss:$8 sps:$4 sm:$0xff]  }
  0x3f   : > { %v1637_v1 = vld [vmem:[#allocation4 + $0xc0] ss:$8 sps:$4 sm:$0xff]   ;;  %v1642_v2 = vld [vmem:[#allocation4 + $0xb4] ss:$8 sps:$4 sm:$0xff]   ;;  %v1640_v3 = vld [vmem:[#allocation4 + $0xb0] ss:$8 sps:$4 sm:$0xff]  }
  0x40   : > { %698 = vmatpush1.bf16.msra.mxu1 %v1573_v20  ;;  %v1741_v4 = vmov 1966171168   ;;  %v1387_v9 = vld.sshfl [vmem:[%s1962_s2] sm:$0x11 pattern:$0x75316420] }
  0x41   : > { %699 = vmatprep.subr.bf16.mxu1 %v1574_v21  ;;  %987 = vmatpush1.bf16.msra.mxu0 %v1610_v46  ;;  %v460_v5 = vunpack.c.l.s4 %v1741_v4  ;;  %v458_v11 = vcombine.high %v1387_v9, %v1387_v9  ;;  %v1871_v16 = vsub.s32 0, %v463_v8  ;;  %v1648_v41 = vld [vmem:[#allocation4 + $0x94] ss:$8 sps:$4 sm:$0xff]   ;;  %v1646_v42 = vld [vmem:[#allocation4 + $0x90] ss:$8 sps:$4 sm:$0xff]  }
  0x42   : > { %988 = vmatprep.subr.bf16.mxu0 %v1615_v47  ;;  %v1651_v43 = vld [vmem:[#allocation4 + $0x84] ss:$8 sps:$4 sm:$0xff]   ;;  %v1649_v44 = vld [vmem:[#allocation4 + $0x80] ss:$8 sps:$4 sm:$0xff]   ;;  %v1652_v45 = vld [vmem:[%s1967_s7 + $0x78] sm:$0xff]  }
  0x43   : > { %v461_v7 = vunpack.c.0.s8 %v460_v5  ;;  %v1653_v46 = vld [vmem:[%s1967_s7 + $0x38] sm:$0xff]   ;;  %v1654_v47 = vld [vmem:[%s1967_s7 + $0x70] sm:$0xff]  }
  0x44   : > { %700 = vmatpush1.bf16.msra.mxu1 %v1576_v22 }
  0x45   : > { %701 = vmatprep.subr.bf16.mxu1 %v1577_v23  ;;  %989 = vmatpush1.bf16.msra.mxu0 %v1613_v48  ;;  %v1867_v10 = vsub.s32 %v461_v7, %v463_v8  ;;  %v1655_v48 = vld [vmem:[%s1967_s7 + $0x30] sm:$0xff]  }
  0x46   : > { %990 = vmatprep.subr.bf16.mxu0 %v1618_v49  ;;  %v1656_v49 = vld [vmem:[%s1967_s7 + $0x68] sm:$0xff]  }
  0x47   : > { %v465_v12 = vrot.slane %v1387_v9, %v1867_v10  ;;  %v472_v13 = vrot.slane %v458_v11, %v1867_v10 }
  0x48   : > { %702 = vmatpush1.bf16.msra.mxu1 %v1579_v24 }
  0x49   : > { %703 = vmatprep.subr.bf16.mxu1 %v1580_v25  ;;  %991 = vmatpush1.bf16.msra.mxu0 %v1616_v50  ;;  %v474_v15 = vpack.i.b16 %v465_v12, %v465_v12  ;;  %v481_v17 = vpack.i.b16 %v472_v13, %v472_v13  ;;  %v1657_v50 = vld [vmem:[%s1967_s7 + $0x28] sm:$0xff]  }
  0x4a   : > { %992 = vmatprep.subr.bf16.mxu0 %v1621_v51  ;;  %v1658_v51 = vld [vmem:[%s1967_s7 + $0x60] sm:$0xff]  }
  0x4b   : > { %v479_v20 = vrot.slane %v474_v15, %v1871_v16  ;;  %v486_v22 = vrot.slane %v481_v17, %v1871_v16 }
  0x4c   : > { %704 = vmatpush2.bf16.msra.mxu1 %v1582_v26 }
  0x4d   : > { %705 = vmatprep.subr.bf16.mxu1 %v1583_v27  ;;  %993 = vmatpush1.bf16.msra.mxu0 %v1619_v52  ;;  %v1659_v52 = vld [vmem:[%s1967_s7 + $0x20] sm:$0xff]  }
  0x4e   : > { %994 = vmatprep.subr.bf16.mxu0 %v1624_v53  ;;  %v1660_v53 = vld [vmem:[%s1967_s7 + $0x58] sm:$0xff]  }
  0x50   : > { %706 = vmatpush2.bf16.msra.mxu1 %v1585_v28 }
  0x51   : > { %707 = vmatprep.subr.bf16.mxu1 %v1586_v29  ;;  %995 = vmatpush1.bf16.msra.mxu0 %v1622_v54  ;;  %v1661_v54 = vld [vmem:[%s1967_s7 + $0x18] sm:$0xff]  }
  0x52   : > { %996 = vmatprep.subr.bf16.mxu0 %v1627_v55  ;;  %v1420_v55 = vld.sshfl [vmem:[%s1964_s4] sm:$0x11 pattern:$0x75316420] }
  0x54   : > { %708 = vmatpush2.bf16.msra.mxu1 %v1588_v30 }
  0x55   : > { %709 = vmatprep.subr.bf16.mxu1 %v1589_v31  ;;  %997 = vmatpush1.bf16.msra.mxu0 %v1625_v56  ;;  %v753_v56 = vcombine.high %v1420_v55, %v1420_v55 }
  0x56   : > { %998 = vmatprep.subr.bf16.mxu0 %v1630_v57  ;;  %v760_v57 = vrot.slane %v1420_v55, %v1867_v10 }
  0x58   : > { %710 = vmatpush2.bf16.msra.mxu1 %v1591_v32 }
  0x59   : > { %711 = vmatprep.subr.bf16.mxu1 %v1592_v33  ;;  %999 = vmatpush2.bf16.msra.mxu0 %v1628_v58  ;;  %v767_v58 = vrot.slane %v753_v56, %v1867_v10  ;;  %v1264_v56 = vld [vmem:[%s1968_s8] sm:$0x1] }
  0x5a   : > { %1000 = vmatprep.subr.bf16.mxu0 %v1633_v59 }
  0x5c   : > { %712 = vmatpush2.bf16.msra.mxu1 %v1594_v34 }
  0x5d   : > { %713 = vmatprep.subr.bf16.mxu1 %v1595_v35  ;;  %1001 = vmatpush2.bf16.msra.mxu0 %v1631_v60  ;;  %v769_v60 = vpack.i.b16 %v760_v57, %v760_v57 }
  0x5e   : > { %1002 = vmatprep.subr.bf16.mxu0 %v1636_v61  ;;  %v776_v61 = vpack.i.b16 %v767_v58, %v767_v58  ;;  %v1266_v58 = vpack.i.b16 %v1264_v56, %v1264_v56 }
  0x60   : > { %714 = vmatpush2.bf16.msra.mxu1 %v1597_v36 }
  0x61   : > { %715 = vmatprep.subr.bf16.mxu1 %v1598_v37  ;;  %1003 = vmatpush2.bf16.msra.mxu0 %v1634_v62 }
  0x62   : > { %1004 = vmatprep.subr.bf16.mxu0 %v1639_v63 }
  0x64   : > { %716 = vmatpush2.bf16.msra.mxu1 %v1600_v38 }
  0x65   : > { %717 = vmatprep.subr.bf16.mxu1 %v1601_v39  ;;  %1005 = vmatpush2.bf16.msra.mxu0 %v1637_v1  ;;  %v1645_v39 = vld [vmem:[#allocation4 + $0xa4] ss:$8 sps:$4 sm:$0xff]   ;;  %v774_v1 = vrot.slane %v769_v60, %v1871_v16 }
  0x66   : > { %1006 = vmatprep.subr.bf16.mxu0 %v1642_v2 }
  0x68   : > { %718 = vmatpush2.bf16.msra.mxu1 %v1603_v40  ;;  %v1643_v40 = vld [vmem:[#allocation4 + $0xa0] ss:$8 sps:$4 sm:$0xff]  }
  0x69   : > { %1007 = vmatpush2.bf16.msra.mxu0 %v1640_v3  ;;  %1504 = vmatprep.subr.bf16.mxu1 %v1652_v45  ;;  %v781_v3 = vrot.slane %v776_v61, %v1871_v16 }
  0x6a   : > { %1008 = vmatprep.subr.bf16.mxu0 %v1645_v39 }
  0x6d   : > { %1009 = vmatpush2.bf16.msra.mxu0 %v1643_v40 }
  0x6e   : > { %1010 = vmatprep.subr.bf16.mxu0 %v1648_v41 }
  0x71   : > { %1011 = vmatpush2.bf16.msra.mxu0 %v1646_v42 }
  0x72   : > { %1012 = vmatprep.subr.bf16.mxu0 %v1651_v43 }
  0x75   : > { %1013 = vmatpush2.bf16.msra.mxu0 %v1649_v44 }
  0x76   : > { %1476 = vmatprep.subr.bf16.mxu0 %v1652_v45 }
  0xf2   : > { %v426_v14 = vpop.f32.mrf.mxu0 }
  0xf4   : > { %v428_v18 = vpop.f32.mrf.mxu0 }
  0xf6   : > { %v430_v19 = vpop.f32.mrf.mxu0 }
  0xf7   : > { %v445_v21 = vpack.c.bf16 %v430_v19, %v426_v14 }
  0xf8   : > { %v432_v23 = vpop.f32.mrf.mxu0 }
  0xf9   : > { %v446_v24 = vpack.c.bf16 %v432_v23, %v428_v18  ;;  %v487_v25 = vadd.bf16 %v479_v20, %v445_v21  ;;  %v1663_v23 = vld [vmem:[%s1967_s7 + $0x10] sm:$0xff]  }
  0xfa   : > { %v436_v26 = vpop.f32.mrf.mxu0 }
  0xfb   : > { %v488_v27 = vadd.bf16 %v486_v22, %v446_v24  ;;  %v491_v31 = vmax.bf16 %v1740_v0, %v487_v25  ;;  %v1664_v24 = vld [vmem:[%s1967_s7 + $0x48] sm:$0xff]  }
  0xfc   : > { %v438_v28 = vpop.f32.mrf.mxu0  ;;  %v1665_v25 = vld [vmem:[%s1967_s7 + $0x8] sm:$0xff]  }
  0xfd   : > { %v492_v29 = vmax.bf16 %v1740_v0, %v488_v27  ;;  %v1667_v27 = vld [vmem:[%s1967_s7] sm:$0xff]  }
  0xfe   : > { %v440_v30 = vpop.f32.mrf.mxu0 }
  0xff   : > { %v447_v32 = vpack.c.bf16 %v440_v30, %v436_v26  ;;  %719 = vmatprep.mubr.bf16.mxu1 %v492_v29  ;;  %v1666_v26 = vld [vmem:[%s1967_s7 + $0x40] sm:$0xff]  }
 0x100   : > { %v442_v33 = vpop.f32.mrf.mxu0  ;;  %720 = vmatmul.mubr.bf16.vlgmr.msra.gmra.mxu1 %v491_v31 }
 0x101   : > { %v448_v34 = vpack.c.bf16 %v442_v33, %v438_v28  ;;  %v489_v35 = vadd.bf16 %v479_v20, %v447_v32  ;;  %1512 = vmatpush3.bf16.msra.mxu1 %v1653_v46  ;;  %v1453_v28 = vld.sshfl [vmem:[%s1966_s6] sm:$0x11 pattern:$0x75316420] }
 0x102   : > { %1505 = vmatprep.subr.bf16.mxu1 %v1654_v47  ;;  %v1048_v29 = vcombine.high %v1453_v28, %v1453_v28  ;;  %v1055_v30 = vrot.slane %v1453_v28, %v1867_v10 }
 0x103   : > { %v490_v36 = vadd.bf16 %v486_v22, %v448_v34  ;;  %v493_v38 = vmax.bf16 %v1740_v0, %v489_v35  ;;  %v1662_v22 = vld [vmem:[%s1967_s7 + $0x50] sm:$0xff]  }
 0x104   : > { %v1062_v31 = vrot.slane %v1048_v29, %v1867_v10  ;;  %v1064_v33 = vpack.i.b16 %v1055_v30, %v1055_v30 }
 0x105   : > { %v494_v37 = vmax.bf16 %v1740_v0, %v490_v36  ;;  %1513 = vmatpush3.bf16.msra.mxu1 %v1655_v48 }
 0x106   : > { %1506 = vmatprep.subr.bf16.mxu1 %v1656_v49  ;;  %v1071_v34 = vpack.i.b16 %v1062_v31, %v1062_v31 }
 0x107   : > { %729 = vmatprep.mubr.bf16.mxu1 %v494_v37  ;;  %v1069_v37 = vrot.slane %v1064_v33, %v1871_v16 }
 0x108   : > { %730 = vmatmul.mubr.bf16.gmra.mxu1 %v493_v38  ;;  %v1076_v39 = vrot.slane %v1071_v34, %v1871_v16 }
 0x109   : > { %1514 = vmatpush3.bf16.msra.mxu1 %v1657_v50 }
 0x10a   : > { %1507 = vmatprep.subr.bf16.mxu1 %v1658_v51 }
 0x10d   : > { %1515 = vmatpush3.bf16.msra.mxu1 %v1659_v52 }
 0x10e   : > { %1508 = vmatprep.subr.bf16.mxu1 %v1660_v53 }
 0x111   : > { %1516 = vmatpush3.bf16.msra.mxu1 %v1661_v54 }
 0x112   : > { %1509 = vmatprep.subr.bf16.mxu1 %v1662_v22 }
 0x115   : > { %1517 = vmatpush3.bf16.msra.mxu1 %v1663_v23 }
 0x116   : > { %1510 = vmatprep.subr.bf16.mxu1 %v1664_v24 }
 0x119   : > { %1518 = vmatpush3.bf16.msra.mxu1 %v1665_v25 }
 0x11a   : > { %1511 = vmatprep.subr.bf16.mxu1 %v1666_v26 }
 0x11d   : > { %1519 = vmatpush3.bf16.msra.mxu1 %v1667_v27 }
 0x1c0   : > { %v721_v59 = vpop.f32.mrf.mxu1 }
 0x1c2   : > { %v723_v62 = vpop.f32.mrf.mxu1 }
 0x1c4   : > { %v725_v63 = vpop.f32.mrf.mxu1 }
 0x1c5   : > { %v740_v2 = vpack.c.bf16 %v725_v63, %v721_v59  ;;  %v1271_v63 = vrot.slane %v1266_v58, %v1871_v16 }
 0x1c6   : > { %v727_v4 = vpop.f32.mrf.mxu1 }
 0x1c7   : > { %v741_v5 = vpack.c.bf16 %v727_v4, %v723_v62  ;;  %v782_v6 = vadd.bf16 %v774_v1, %v740_v2 }
 0x1c8   : > { %v731_v7 = vpop.f32.mrf.mxu1 }
 0x1c9   : > { %v783_v8 = vadd.bf16 %v781_v3, %v741_v5  ;;  %v786_v12 = vmax.bf16 %v1740_v0, %v782_v6 }
 0x1ca   : > { %v733_v9 = vpop.f32.mrf.mxu1 }
 0x1cb   : > { %v787_v11 = vmax.bf16 %v1740_v0, %v783_v8 }
 0x1cc   : > { %v735_v13 = vpop.f32.mrf.mxu1 }
 0x1cd   : > { %v742_v14 = vpack.c.bf16 %v735_v13, %v731_v7  ;;  %1014 = vmatprep.mubr.bf16.mxu0 %v787_v11 }
 0x1ce   : > { %v737_v15 = vpop.f32.mrf.mxu1  ;;  %1015 = vmatmul.mubr.bf16.vlgmr.msra.gmra.mxu0 %v786_v12 }
 0x1cf   : > { %v743_v17 = vpack.c.bf16 %v737_v15, %v733_v9  ;;  %1477 = vmatpush3.bf16.msra.mxu0 %v1653_v46  ;;  %v784_v18 = vadd.bf16 %v774_v1, %v742_v14 }
 0x1d0   : > { %1478 = vmatprep.subr.bf16.mxu0 %v1654_v47 }
 0x1d1   : > { %v785_v19 = vadd.bf16 %v781_v3, %v743_v17  ;;  %v788_v21 = vmax.bf16 %v1740_v0, %v784_v18 }
 0x1d3   : > { %v789_v20 = vmax.bf16 %v1740_v0, %v785_v19  ;;  %1479 = vmatpush3.bf16.msra.mxu0 %v1655_v48 }
 0x1d4   : > { %1480 = vmatprep.subr.bf16.mxu0 %v1656_v49 }
 0x1d5   : > { %1024 = vmatprep.mubr.bf16.mxu0 %v789_v20 }
 0x1d6   : > { %1025 = vmatmul.mubr.bf16.gmra.mxu0 %v788_v21 }
 0x1d7   : > { %1481 = vmatpush3.bf16.msra.mxu0 %v1657_v50 }
 0x1d8   : > { %1482 = vmatprep.subr.bf16.mxu0 %v1658_v51 }
 0x1db   : > { %1483 = vmatpush3.bf16.msra.mxu0 %v1659_v52 }
 0x1dc   : > { %1484 = vmatprep.subr.bf16.mxu0 %v1660_v53 }
 0x1df   : > { %1485 = vmatpush3.bf16.msra.mxu0 %v1661_v54 }
 0x1e0   : > { %1486 = vmatprep.subr.bf16.mxu0 %v1662_v22 }
 0x1e3   : > { %1487 = vmatpush3.bf16.msra.mxu0 %v1663_v23 }
 0x1e4   : > { %1488 = vmatprep.subr.bf16.mxu0 %v1664_v24 }
 0x1e7   : > { %1489 = vmatpush3.bf16.msra.mxu0 %v1665_v25 }
 0x1e8   : > { %1490 = vmatprep.subr.bf16.mxu0 %v1666_v26 }
 0x1eb   : > { %1491 = vmatpush3.bf16.msra.mxu0 %v1667_v27 }
 0x28e   : > { %v1016_v32 = vpop.f32.mrf.mxu0 }
 0x290   : > { %v1018_v35 = vpop.f32.mrf.mxu0 }
 0x292   : > { %v1020_v36 = vpop.f32.mrf.mxu0 }
 0x293   : > { %v1035_v38 = vpack.c.bf16 %v1020_v36, %v1016_v32 }
 0x294   : > { %v1022_v40 = vpop.f32.mrf.mxu0 }
 0x295   : > { %v1036_v41 = vpack.c.bf16 %v1022_v40, %v1018_v35  ;;  %v1077_v42 = vadd.bf16 %v1069_v37, %v1035_v38 }
 0x296   : > { %v1026_v43 = vpop.f32.mrf.mxu0 }
 0x297   : > { %v1078_v44 = vadd.bf16 %v1076_v39, %v1036_v41  ;;  %v1081_v10 = vmax.bf16 %v1740_v0, %v1077_v42 }
 0x298   : > { %v1028_v45 = vpop.f32.mrf.mxu0 }
 0x299   : > { %v1082_v46 = vmax.bf16 %v1740_v0, %v1078_v44 }
 0x29a   : > { %v1030_v47 = vpop.f32.mrf.mxu0 }
 0x29b   : > { %v1037_v48 = vpack.c.bf16 %v1030_v47, %v1026_v43  ;;  %1245 = vmatprep.mubr.bf16.mxu0 %v1082_v46 }
 0x29c   : > { %v1032_v49 = vpop.f32.mrf.mxu0  ;;  %1246 = vmatmul.mubr.bf16.vlgmr.msra.gmra.mxu0 %v1081_v10 }
 0x29d   : > { %v1038_v50 = vpack.c.bf16 %v1032_v49, %v1028_v45  ;;  %v1079_v51 = vadd.bf16 %v1069_v37, %v1037_v48 }
 0x29f   : > { %v1080_v52 = vadd.bf16 %v1076_v39, %v1038_v50  ;;  %v1083_v54 = vmax.bf16 %v1740_v0, %v1079_v51 }
 0x2a1   : > { %v1084_v53 = vmax.bf16 %v1740_v0, %v1080_v52 }
 0x2a3   : > { %1253 = vmatprep.mubr.bf16.mxu1 %v1084_v53 }
 0x2a4   : > { %1254 = vmatmul.mubr.bf16.vlgmr.msra.gmra.mxu1 %v1083_v54 }
 0x35c   : > { %v1492_v55 = vpop.f32.mrf.mxu0 }
 0x35e   : > { %v1493_v57 = vpop.f32.mrf.mxu0 }
 0x35f   : > { %v1494_v61 = vadd.f32 %v1493_v57, %v1492_v55 }
 0x360   : > { %v1495_v59 = vpop.f32.mrf.mxu0 }
 0x362   : > { %v1496_v60 = vpop.f32.mrf.mxu0 }
 0x363   : > { %v1497_v62 = vadd.f32 %v1496_v60, %v1495_v59 }
 0x364   : > { %v1498_v1 = vpop.f32.mrf.mxu1 }
 0x365   : > { %v1262_v2 = vpack.c.bf16 %v1497_v62, %v1494_v61 }
 0x366   : > { %v1499_v3 = vpop.f32.mrf.mxu1 }
 0x367   : > { %v1272_v0 = vadd.bf16 %v1271_v63, %v1262_v2  ;;  %v1500_v8 = vadd.f32 %v1499_v3, %v1498_v1 }
 0x368   : > { %v1501_v4 = vpop.f32.mrf.mxu1 }
 0x369   : > { %v1470_v5 = vcombine.low %v1272_v0, %v1272_v0  ;;  %v1471_v6 = vcombine.high %v1272_v0, %v1272_v0 }
 0x36a   : > { %v1502_v7 = vpop.f32.mrf.mxu1 }
 0x36b   : > { %1288 = vst [vmem:[%s364_s20] sm:$0xf] %v1470_v5  ;;  %v1503_v9 = vadd.f32 %v1502_v7, %v1501_v4  ;;  %1289 = vst [vmem:[%s364_s20 + $0x4] sm:$0xf] %v1471_v6 }
 0x36d   : > { %v1263_v11 = vpack.c.bf16 %v1503_v9, %v1500_v8 }
 0x36f   : > { %v1273_v12 = vadd.bf16 %v1271_v63, %v1263_v11 }
 0x371   : > { %v1472_v16 = vcombine.low %v1273_v12, %v1273_v12  ;;  %v1473_v13 = vcombine.high %v1273_v12, %v1273_v12 }
 0x373   : > { %1290 = vst [vmem:[%s364_s20 + $0x8] sm:$0xf] %v1472_v16  ;;  %1291 = vst [vmem:[%s364_s20 + $0xc] sm:$0xf] %v1473_v13 }
 0x374 PF: > { %s21_s30 = sadd.s32 1, %s1734_s30  }
 0x375   : > { %p18_p2 = scmp.ge.s32.totalorder %s21_s30, 4  }
 0x377   :  { %20 = sbr.rel (!%p18_p2) target bundleno = 2 (0x2), region = 95 }
 0x37c   :  { %1314 = vsyncpa [#allocation3], 1 }
 0x37d   :  { %1316 = vsyncpa [#allocation3 + $0x1], 1 }
 0x37e   :  { %1317 = vsyncpa [#allocation5], 1 }

</bundles_post_ra>
